<compile_context>
chip_gen: v7x
topology: tpu7x:2x2x1
jax: 0.10.0
libtpu: 0.0.40
codegen_flags: <defaults>
</compile_context>

<pallas_src>
import jax
import jax.numpy as jnp
from jax.experimental import pallas as pl
from jax.experimental.pallas import tpu as pltpu


def lfm_kernel(feat_ref, w_ref, fcb_ref, bu_ref, bi_ref, uid_ref, iid_ref,
               out_ref):
    # feat_ref: (D, TB) f32   -- batch on the lane axis
    # w_ref:    (1, D)  f32
    # fcb_ref:  (1, 1)  f32 in SMEM
    # bu_ref:   (U, 1)  f32, bi_ref: (I, 1) f32
    # uid_ref / iid_ref: (1, TB) int32
    # out_ref:  (1, TB) f32   -- lane-dense output tile

    # fc(feature): (1, D) @ (D, TB) -> (1, TB) on the MXU, f32 accumulate.
    logits = jnp.dot(w_ref[...], feat_ref[...],
                     preferred_element_type=jnp.float32)          # (1, TB)

    U = bu_ref.shape[0]
    I = bi_ref.shape[0]
    TB = out_ref.shape[1]

    uid = uid_ref[...]                                            # (1, TB)
    iid = iid_ref[...]                                            # (1, TB)

    # b_users[user_id]: equality mask on the VPU, sublane reduce on the XLU.
    u_iota = jax.lax.broadcasted_iota(jnp.int32, (U, TB), 0)      # (U, TB)
    bu = jnp.sum(jnp.where(u_iota == uid, bu_ref[...], 0.0),
                 axis=0, keepdims=True)                           # (1, TB)

    # b_items[item_id]: same pattern.
    i_iota = jax.lax.broadcasted_iota(jnp.int32, (I, TB), 0)      # (I, TB)
    bi = jnp.sum(jnp.where(i_iota == iid, bi_ref[...], 0.0),
                 axis=0, keepdims=True)                           # (1, TB)

    out_ref[...] = logits + fcb_ref[0, 0] + bu + bi               # (1, TB)


def lfm_forward(feature, fc_w, fc_b, b_users, b_items, user_id, item_id):
    B, D = feature.shape
    U = b_users.shape[0]
    I = b_items.shape[0]

    # Batch tile (lane axis). Biggest reasonable tile; padding to 128 lanes.
    tb = 128 if B <= 128 else 512
    Bp = pl.cdiv(B, tb) * tb

    # Lane-dense layouts prepared in the wrapper (pure layout plumbing).
    feat_t = jnp.zeros((D, Bp), jnp.float32)
    feat_t = feat_t.at[:, :B].set(feature.astype(jnp.float32).T)
    uid_l = jnp.zeros((1, Bp), jnp.int32)
    uid_l = uid_l.at[0, :B].set(user_id.reshape(-1).astype(jnp.int32))
    iid_l = jnp.zeros((1, Bp), jnp.int32)
    iid_l = iid_l.at[0, :B].set(item_id.reshape(-1).astype(jnp.int32))

    out = pl.pallas_call(
        lfm_kernel,
        out_shape=jax.ShapeDtypeStruct((1, Bp), jnp.float32),
        grid_spec=pltpu.PrefetchScalarGridSpec(
            num_scalar_prefetch=0,
            grid=(Bp // tb,),
            in_specs=[
                pl.BlockSpec((D, tb), lambda i: (0, i)),     # feature^T tile
                pl.BlockSpec((1, D), lambda i: (0, 0)),      # fc weight
                pl.BlockSpec(                                 # fc bias scalar
                    memory_space=pltpu.MemorySpace.SMEM),
                pl.BlockSpec((U, 1), lambda i: (0, 0)),      # user bias table
                pl.BlockSpec((I, 1), lambda i: (0, 0)),      # item bias table
                pl.BlockSpec((1, tb), lambda i: (0, i)),     # user ids (lanes)
                pl.BlockSpec((1, tb), lambda i: (0, i)),     # item ids (lanes)
            ],
            out_specs=pl.BlockSpec((1, tb), lambda i: (0, i)),
        ),
        compiler_params=pltpu.CompilerParams(
            dimension_semantics=("parallel",)),
    )(feat_t,
      fc_w.astype(jnp.float32),
      fc_b.reshape(1, 1).astype(jnp.float32),
      b_users.astype(jnp.float32),
      b_items.astype(jnp.float32),
      uid_l, iid_l)

    # Back to the PyTorch output layout (B, 1).
    return out[0, :B].reshape(B, 1)


if __name__ == "__main__":
    # Small synthetic shapes consistent with the module.
    B, dim = 8, 32
    user_num, item_num = 16, 12

    key = jax.random.PRNGKey(0)
    k_feat, k_w, k_b, k_bu, k_bi, k_uid, k_iid = jax.random.split(key, 7)

    # Parameter init mirroring LFM_net.init_weight():
    #   fc.weight ~ U(-0.1, 0.1), fc.bias ~ U(0.5, 1.5),
    #   b_users   ~ U(0.5, 1.5),  b_items stays randn (never re-initialized).
    fc_w = jax.random.uniform(k_w, (1, dim), jnp.float32, -0.1, 0.1)
    fc_b = jax.random.uniform(k_b, (1, 1), jnp.float32, 0.5, 1.5)
    b_users = jax.random.uniform(k_bu, (user_num, 1), jnp.float32, 0.5, 1.5)
    b_items = jax.random.normal(k_bi, (item_num, 1), jnp.float32)

    feature = jax.random.normal(k_feat, (B, dim), jnp.float32)
    user_id = jax.random.randint(k_uid, (B,), 0, user_num, jnp.int32)
    item_id = jax.random.randint(k_iid, (B,), 0, item_num, jnp.int32)

    out = lfm_forward(feature, fc_w, fc_b, b_users, b_items, user_id, item_id)
    out = jax.block_until_ready(out)

    # Pure-JAX reference for correctness.
    ref = (feature @ fc_w.T + fc_b) + b_users[user_id] + b_items[item_id]
    assert out.shape == (B, 1)
    assert jnp.allclose(out, ref, atol=1e-4, rtol=1e-4), (
        f"max abs err = {jnp.max(jnp.abs(out - ref))}")

    print("KERNEL_OK")
</pallas_src>

<mosaic_0001>
module attributes {stable_mosaic.version = 11 : i64} {
  func.func @lfm_kernel(%arg0: i32, %arg1: memref<32x128xf32, #tpu.memory_space<vmem>>, %arg2: memref<1x32xf32, #tpu.memory_space<vmem>>, %arg3: memref<1x1xf32, #tpu.memory_space<smem>>, %arg4: memref<16x1xf32, #tpu.memory_space<vmem>>, %arg5: memref<12x1xf32, #tpu.memory_space<vmem>>, %arg6: memref<1x128xi32, #tpu.memory_space<vmem>>, %arg7: memref<1x128xi32, #tpu.memory_space<vmem>>, %arg8: memref<1x128xf32, #tpu.memory_space<vmem>>) attributes {dimension_semantics = [#tpu.dimension_semantics<parallel>], iteration_bounds = array<i64: 1>, scalar_prefetch = 0 : i64, scratch_operands = 0 : i64, tpu.core_type = #tpu.core_type<tc>, window_params = [{transform_indices = @transform_0, window_bounds = array<i64: 32, 128>}, {pipeline_mode = #tpu.pipeline_mode<synchronous>, transform_indices = @transform_1, window_bounds = array<i64: 1, 32>}, {transform_indices = @transform_2, window_bounds = array<i64: 1, 1>}, {pipeline_mode = #tpu.pipeline_mode<synchronous>, transform_indices = @transform_3, window_bounds = array<i64: 16, 1>}, {pipeline_mode = #tpu.pipeline_mode<synchronous>, transform_indices = @transform_4, window_bounds = array<i64: 12, 1>}, {transform_indices = @transform_5, window_bounds = array<i64: 1, 128>}, {transform_indices = @transform_6, window_bounds = array<i64: 1, 128>}, {transform_indices = @transform_7, window_bounds = array<i64: 1, 128>}]} {
    %c0 = arith.constant 0 : index
    %c0_0 = arith.constant 0 : index
    %0 = vector.load %arg2[%c0, %c0_0] : memref<1x32xf32, #tpu.memory_space<vmem>>, vector<1x32xf32>
    %c0_1 = arith.constant 0 : index
    %c0_2 = arith.constant 0 : index
    %1 = vector.load %arg1[%c0_1, %c0_2] : memref<32x128xf32, #tpu.memory_space<vmem>>, vector<32x128xf32>
    %cst = arith.constant dense<0.000000e+00> : vector<1x128xf32>
    %2 = tpu.matmul %0, %1, %cst {dimension_numbers = #tpu.dot_dimension_numbers<[1], [0], [0], [1], [0, 0, 1, 1], [], []>} : vector<1x32xf32>, vector<32x128xf32>, vector<1x128xf32> -> vector<1x128xf32>
    %c0_3 = arith.constant 0 : index
    %c0_4 = arith.constant 0 : index
    %3 = vector.load %arg6[%c0_3, %c0_4] : memref<1x128xi32, #tpu.memory_space<vmem>>, vector<1x128xi32>
    %c0_5 = arith.constant 0 : index
    %c0_6 = arith.constant 0 : index
    %4 = vector.load %arg7[%c0_5, %c0_6] : memref<1x128xi32, #tpu.memory_space<vmem>>, vector<1x128xi32>
    %5 = tpu.iota {dimensions = array<i32: 0>} : vector<16x128xi32>
    %6 = vector.broadcast %3 : vector<1x128xi32> to vector<16x128xi32>
    %7 = arith.cmpi eq, %5, %6 : vector<16x128xi32>
    %c0_7 = arith.constant 0 : index
    %c0_8 = arith.constant 0 : index
    %8 = vector.load %arg4[%c0_7, %c0_8] : memref<16x1xf32, #tpu.memory_space<vmem>>, vector<16x1xf32>
    %cst_9 = arith.constant 0.000000e+00 : f32
    %9 = vector.shape_cast %8 : vector<16x1xf32> to vector<16x1xf32>
    %10 = vector.broadcast %9 : vector<16x1xf32> to vector<16x128xf32>
    %11 = vector.broadcast %cst_9 : f32 to vector<16x128xf32>
    %12 = arith.select %7, %10, %11 : vector<16x128xi1>, vector<16x128xf32>
    %cst_10 = arith.constant dense<0.000000e+00> : vector<128xf32>
    %13 = vector.multi_reduction <add>, %12, %cst_10 [0] : vector<16x128xf32> to vector<128xf32>
    %14 = vector.shape_cast %13 : vector<128xf32> to vector<1x128xf32>
    %15 = tpu.iota {dimensions = array<i32: 0>} : vector<12x128xi32>
    %16 = vector.broadcast %4 : vector<1x128xi32> to vector<12x128xi32>
    %17 = arith.cmpi eq, %15, %16 : vector<12x128xi32>
    %c0_11 = arith.constant 0 : index
    %c0_12 = arith.constant 0 : index
    %18 = vector.load %arg5[%c0_11, %c0_12] : memref<12x1xf32, #tpu.memory_space<vmem>>, vector<12x1xf32>
    %cst_13 = arith.constant 0.000000e+00 : f32
    %19 = vector.shape_cast %18 : vector<12x1xf32> to vector<12x1xf32>
    %20 = vector.broadcast %19 : vector<12x1xf32> to vector<12x128xf32>
    %21 = vector.broadcast %cst_13 : f32 to vector<12x128xf32>
    %22 = arith.select %17, %20, %21 : vector<12x128xi1>, vector<12x128xf32>
    %cst_14 = arith.constant dense<0.000000e+00> : vector<128xf32>
    %23 = vector.multi_reduction <add>, %22, %cst_14 [0] : vector<12x128xf32> to vector<128xf32>
    %24 = vector.shape_cast %23 : vector<128xf32> to vector<1x128xf32>
    %c0_15 = arith.constant 0 : index
    %c0_16 = arith.constant 0 : index
    %25 = memref.load %arg3[%c0_15, %c0_16] : memref<1x1xf32, #tpu.memory_space<smem>>
    %26 = vector.broadcast %25 : f32 to vector<1x128xf32>
    %27 = arith.addf %2, %26 : vector<1x128xf32>
    %28 = arith.addf %27, %14 : vector<1x128xf32>
    %29 = arith.addf %28, %24 : vector<1x128xf32>
    %c0_17 = arith.constant 0 : index
    %c0_18 = arith.constant 0 : index
    %30 = vector.load %arg8[%c0_17, %c0_18] : memref<1x128xf32, #tpu.memory_space<vmem>>, vector<1x128xf32>
    tpu.vector_store %arg8[%c0_17, %c0_18], %29 {strides = array<i32>} : memref<1x128xf32, #tpu.memory_space<vmem>>, vector<1x128xf32>,
    return
  }
  func.func @transform_0(%arg0: i32) -> (i32, i32) {
    %c0_i32 = arith.constant 0 : i32
    %c0_i32_0 = arith.constant 0 : i32
    return %c0_i32, %arg0 : i32, i32
  }
  func.func @transform_1(%arg0: i32) -> (i32, i32) {
    %c0_i32 = arith.constant 0 : i32
    %c0_i32_0 = arith.constant 0 : i32
    %c0_i32_1 = arith.constant 0 : i32
    return %c0_i32, %c0_i32_0 : i32, i32
  }
  func.func @transform_2(%arg0: i32) -> (i32, i32) {
    %c0_i32 = arith.constant 0 : i32
    %c0_i32_0 = arith.constant 0 : i32
    %c0_i32_1 = arith.constant 0 : i32
    return %c0_i32, %c0_i32_0 : i32, i32
  }
  func.func @transform_3(%arg0: i32) -> (i32, i32) {
    %c0_i32 = arith.constant 0 : i32
    %c0_i32_0 = arith.constant 0 : i32
    %c0_i32_1 = arith.constant 0 : i32
    return %c0_i32, %c0_i32_0 : i32, i32
  }
  func.func @transform_4(%arg0: i32) -> (i32, i32) {
    %c0_i32 = arith.constant 0 : i32
    %c0_i32_0 = arith.constant 0 : i32
    %c0_i32_1 = arith.constant 0 : i32
    return %c0_i32, %c0_i32_0 : i32, i32
  }
  func.func @transform_5(%arg0: i32) -> (i32, i32) {
    %c0_i32 = arith.constant 0 : i32
    %c0_i32_0 = arith.constant 0 : i32
    return %c0_i32, %arg0 : i32, i32
  }
  func.func @transform_6(%arg0: i32) -> (i32, i32) {
    %c0_i32 = arith.constant 0 : i32
    %c0_i32_0 = arith.constant 0 : i32
    return %c0_i32, %arg0 : i32, i32
  }
  func.func @transform_7(%arg0: i32) -> (i32, i32) {
    %c0_i32 = arith.constant 0 : i32
    %c0_i32_0 = arith.constant 0 : i32
    return %c0_i32, %arg0 : i32, i32
  }
}

</mosaic_0001>

<bundles_post_ra>
// kernel: tpu_custom_call.1
= control target key start
LH: loop header
LB: loop body
LE: loop exit
PB: predicated region body
PF: predicated region fallthrough
CT: control target
= control target key end

     0   :  { %v243_v3 = vmov 0.0|0.0   ;;  %vm244_vm0 = vmmov 0   ;;  %v245_v6 = vmov 0.0   ;;  %v246_v8 = vmov 0   ;;  %s336_s0 = inlined_call_operand.vmem [shape: f32[32,128], index: 0, kind: input, shape index: {}]   ;;  %s337_s1 = inlined_call_operand.vmem [shape: f32[1,32], index: 1, kind: input, shape index: {}]   ;;  %s338_s2 = inlined_call_operand.<no memory space> [shape: f32[1,1], index: 2, kind: input, shape index: {}]   ;;  %s339_s3 = inlined_call_operand.vmem [shape: f32[16,1], index: 3, kind: input, shape index: {}]   ;;  %s340_s4 = inlined_call_operand.vmem [shape: f32[12,1], index: 4, kind: input, shape index: {}]   ;;  %s341_s5 = inlined_call_operand.vmem [shape: s32[1,128], index: 5, kind: input, shape index: {}]   ;;  %s342_s6 = inlined_call_operand.vmem [shape: s32[1,128], index: 6, kind: input, shape index: {}]   ;;  %s343_s7 = inlined_call_operand.hbm [shape: f32[1,128], index: 7, kind: output, shape index: {}]  }
   0x1   :  { %v29_v0 = vld [vmem:[%s336_s0] sm:$0xff]  ;;  %v30_v1 = vld [vmem:[%s336_s0 + $0x8] sm:$0xff]  ;;  %v31_v2 = vld [vmem:[%s336_s0 + $0x10] sm:$0xff]  ;;  %206 = vmatprep.subr.bf16.mxu0 %v243_v3  ;;  %203 = vmatprep.mubr.msk.f32.mxu0 %vm244_vm0, %v245_v6 }
   0x2   :  { %v207_v4 = vpack.c.bf16 %v30_v1, %v29_v0  ;;  %v32_v5 = vld [vmem:[%s336_s0 + $0x18] sm:$0xff]  ;;  %v44_v7 = vld [vmem:[%s339_s3] sm:$0xff]  ;;  %217 = vset.pattern.permute.xlu0 %v246_v8  ;;  %218 = vset.pattern.permute.xlu1 %v246_v8  ;;  %v72_v9 = vld [vmem:[%s340_s4 + $0x8] sm:$0xf] }
   0x3   :  { %v210_v10 = vpack.c.bf16 %v32_v5, %v31_v2  ;;  %48 = vperm.xlu0 %217, %v44_v7   ;;  %80 = vperm.xlu1 %218, %v72_v9   ;;  %v45_v11 = vld [vmem:[%s339_s3 + $0x8] sm:$0xff] }
   0x4   :  { %208 = vmatpush3.bf16.msra.mxu0 %v207_v4 }
   0x5   :  { %209 = vmatprep.subr.bf16.mxu0 %v243_v3 }
   0x6   :  { %13 = vsyncpa [#allocation4], 0  ;;  %v71_v12 = vld [vmem:[%s340_s4] sm:$0xff]  ;;  %vm96_vm1 = vcmask 261120   ;;  %v35_v14 = vlaneseq  ;;  %vm85_vm5 = vcmask 1043456   ;;  %v95_v39 = vstv %s338_s2 }
   0x7   :  { %v28_v13 = vld [vmem:[%s337_s1] sm:$0x1]  ;;  %53 = vperm.xlu0 %217, %v45_v11   ;;  %75 = vperm.xlu1 %218, %v71_v12  }
   0x8   :  { %211 = vmatpush3.bf16.msra.mxu0 %v210_v10  ;;  %v36_v15 = vshrl.u32 %v35_v14, 7  ;;  %v188_v19 = vld [vmem:[%s342_s6] ss:$0 sm:$0xff]  ;;  %s247_s6 = smov [#allocation3]  }
   0x9   :  { %v187_v20 = vld [vmem:[%s341_s5] ss:$0 sm:$0xff]  ;;  %s179_s20 = sshll.u32 %s247_s6, 4  ;;  %s180_s20 = int_to_ptr.vmem [resolvable:$true] %s179_s20 }
   0xa   :  { %v37_v17 = vadd.s32 8, %v36_v15  ;;  %vm42_vm3 = vcmp.eq.s32.totalorder %v36_v15, %v187_v20  ;;  %vm69_vm6 = vcmp.eq.s32.totalorder %v36_v15, %v188_v19  ;;  %s219_s21 = scalar_lea.vmem %s180_s20, 16  ;;  %s223_s22 = scalar_lea.vmem %s180_s20, 32 }
   0xb   :  { %204 = vmatmul.mubr.msk.f32.vlgmr.msra.gmra.mrb[0].mxu0 %vm96_vm1, %v28_v13  ;;  %p220_p0 = scmp.ne.s32.totalorder %s180_s20, %s219_s21  ;;  %p224_p1 = scmp.lt.s32.totalorder %s180_s20, %s180_s20 }
   0xc   :  { %vm70_vm2 = vcmp.eq.s32.totalorder %v37_v17, %v188_v19  ;;  %vm43_vm4 = vcmp.eq.s32.totalorder %v37_v17, %v187_v20  ;;  %p225_p2 = scmp.lt.s32.totalorder %s223_s22, %s219_s21 }
   0xe   :  { %p226_p3 = por %p225_p2, %p224_p1 }
  0x10   :  { %p227_p4 = pnand %p226_p3, %p220_p0 }
  0x82   :  { %v49_v16 = vpop.permute.xlu0 %48  ;;  %v81_v18 = vpop.permute.xlu1 %80 }
  0x83   :  { %v84_v22 = vsel %vm70_vm2, %v81_v18, 0.0  ;;  %v56_v24 = vsel %vm42_vm3, %v49_v16, 0.0 }
  0x84   :  { %v86_v26 = vsel %vm85_vm5, %v84_v22, 0.0 }
  0x86   :  { %v54_v21 = vpop.permute.xlu0 %53  ;;  %v76_v23 = vpop.permute.xlu1 %75 }
  0x87   :  { %v57_v25 = vsel %vm43_vm4, %v54_v21, 0.0  ;;  %v83_v27 = vsel %vm69_vm6, %v76_v23, 0.0 }
  0x88   :  { %v58_v28 = vadd.f32 %v57_v25, %v56_v24  ;;  %v87_v29 = vadd.f32 %v86_v26, %v83_v27 }
  0x8a   :  { %v59_v30 = vrot.slane %v58_v28, 4  ;;  %v88_v31 = vrot.slane %v87_v29, 4 }
  0x8c   :  { %v60_v32 = vadd.f32 %v59_v30, %v58_v28  ;;  %v89_v33 = vadd.f32 %v88_v31, %v87_v29 }
  0x8e   :  { %v61_v34 = vrot.slane %v60_v32, 2  ;;  %v90_v35 = vrot.slane %v89_v33, 2 }
  0x90   :  { %v62_v36 = vadd.f32 %v61_v34, %v60_v32  ;;  %v91_v37 = vadd.f32 %v90_v35, %v89_v33 }
  0x92   :  { %v63_v38 = vrot.slane %v62_v36, 1  ;;  %v92_v40 = vrot.slane %v91_v37, 1 }
  0x94   :  { %v64_v42 = vadd.f32 %v63_v38, %v62_v36  ;;  %v93_v46 = vadd.f32 %v92_v40, %v91_v37 }
  0xde   :  { %v166_v41 = vpop.f32.mrb[0].mxu0 }
  0xdf   :  { %v167_v43 = vadd.f32 %v166_v41, %v95_v39  ;;  %v205_v44 = vpop.f32.mrb[1].mxu0 }
  0xe1   :  { %v170_v45 = vadd.f32 %v167_v43, %v64_v42 }
  0xe3   :  { %v171_v47 = vadd.f32 %v170_v45, %v93_v46 }
  0xe5   :  { %172 = vst [vmem:[#allocation3] sm:$0x1] %v171_v47 }
  0xe6   :  { %230 = shalt.err (!%p227_p4)
}
  0xe7   :  { %s231_s24 = scalar_lea.hbm %s343_s7, 16 }
  0xe8   :  { %p232_p5 = scmp.ne.s32.totalorder %s343_s7, %s231_s24  ;;  %p235_p6 = scmp.lt.u32.totalorder %s231_s24, %s343_s7 }
  0xea   :  { %p237_p7 = pnand %p235_p6, %p232_p5 }
  0xec   :  { %240 = shalt.err (!%p237_p7)
}
  0xed   :  { %182 = dma.vmem_to_hbm [thread:$0]  %s180_s20, 16, %s343_s7, [#allocation4]  }
  0xee   :  { %241 = dma.done.wait [#allocation4], 16  }
  0xef   :  { %242 = vsyncadd [#allocation4], 4294967280 }
  0xf0   :  { %186 = vsyncpa [#allocation4], 1 }

</bundles_post_ra>
